<compile_context>
chip_gen: v7x
topology: tpu7x:2x2x1
jax: 0.10.0
libtpu: 0.0.40
codegen_flags: <defaults>
</compile_context>

<pallas_src>
import jax
import jax.numpy as jnp
from jax.experimental import pallas as pl
from jax.experimental.pallas import tpu as pltpu

# "Preset, fixed parameters" of the LAF module (wp, g are module-level globals
# in the PyTorch source). Initialized deterministically in-script.
WP = 1.5   # plasma frequency
G = 0.1    # damping (gamma)
W0 = 0.0   # forward() hard-codes w0 = 0

# Constant folded at trace time:  e2 = _CONST / w   (valid ONLY because W0 == 0).
_CONST = (WP * WP * G) / (1.0 + G * G)

_MIB = 1024 * 1024


def laf_kernel(w_ref, o_ref):
    # e2 = CONST * (1/w): one reciprocal + one VALU multiply per vreg, fully
    # hidden under the HBM-bound block DMA on all generations.
    w = w_ref[...].astype(jnp.float32)
    o_ref[...] = (_CONST * pl.reciprocal(w, approx=False)).astype(o_ref.dtype)


def _device_tuning():
    """Generation-aware (block_bytes, vmem_limit_bytes, num_tensorcores)."""
    try:
        vmem_cap = pltpu.get_tpu_info().vmem_capacity_bytes
    except Exception:
        vmem_cap = None
    if vmem_cap is not None and vmem_cap <= 64 * _MIB:
        # v7x-class: 64 MiB VMEM, ~3.2 TB/s HBM, 2 TensorCores.  Bigger blocks
        # amortize the ~0.35 us per-grid-step cost; 4 double-buffered block
        # buffers (in x2 + out x2) = 24 MiB, well under the 40 MiB limit.
        return 6 * _MIB, 40 * _MIB, 2
    if vmem_cap is not None:
        # v5e / v6e: 128 MiB physical VMEM, 1 TensorCore.  The explicit
        # vmem_limit override is required on v5e (16 MiB scoped default).
        return 4 * _MIB, 64 * _MIB, 1
    # Unknown chip: conservative numbers that fit every generation.
    return 4 * _MIB, 40 * _MIB, 1


def laf_forward(x, *, donate_input=False):
    """Apply the Lorentz Activation Function elementwise via a Pallas kernel."""
    # The closed form e2 = C/w folded into the kernel is only valid for w0 == 0.
    assert W0 == 0.0, "LAF kernel assumes w0 == 0 (as in the PyTorch forward)"

    orig_shape = x.shape
    dtype = x.dtype
    total = x.size
    itemsize = jnp.dtype(dtype).itemsize
    # sublane alignment: 8 rows for f32, 16 for bf16 (sub-32-bit packing)
    sub_align = 8 * (4 // itemsize)

    block_bytes, vmem_limit, num_tc = _device_tuning()

    xf = x.reshape(-1)

    # ------------------------------------------------------------------
    # Lane-dense 2D layout: wide last dim (multiple of 128) so stores are
    # unmasked `vst` and DMAs are few and fat.  Pick a lane width that divides
    # the element count exactly so no padded HBM copy is materialized; the
    # ragged last row-block is handled by Pallas masked partial stores.
    # ------------------------------------------------------------------
    padded = False
    if total % 128 == 0:
        lanes = 128
        while (lanes < 4096 and total % (2 * lanes) == 0
               and total >= 2 * lanes * sub_align):
            lanes *= 2
    else:
        # Rare fallback: element count not a multiple of 128 — pad by at most
        # 127 elements (value 1.0 so the kernel never divides padded zeros).
        lanes = 128
        padded = True
        new_total = pl.cdiv(total, lanes) * lanes
        xf = jnp.pad(xf, (0, new_total - total), constant_values=1)

    rows = xf.size // lanes
    x2 = xf.reshape(rows, lanes)

    # Row tile: target ~block_bytes per block buffer; rounded to sublane
    # alignment (or the whole array if it is smaller than one aligned tile).
    if rows <= sub_align:
        tm = rows                             # block dim == full array dim: legal
    else:
        tm = max(sub_align, min(rows, block_bytes // (lanes * itemsize)))
        tm = (tm // sub_align) * sub_align    # round down; stays >= sub_align

    nb = pl.cdiv(rows, tm)                    # ragged last block is allowed

    # v7x megacore: best-effort keep the block count a multiple of the number
    # of TensorCores so neither core idles on a leftover multi-MiB block.
    if num_tc > 1 and nb > 1 and (nb % num_tc) != 0:
        nb_target = nb + (num_tc - nb % num_tc)
        tm_alt = max(sub_align,
                     ((pl.cdiv(rows, nb_target) + sub_align - 1) // sub_align)
                     * sub_align)
        if pl.cdiv(rows, tm_alt) % num_tc == 0:
            tm = tm_alt
            nb = pl.cdiv(rows, tm)

    n_elems = rows * lanes
    cost = pl.CostEstimate(flops=3 * n_elems,
                           transcendentals=n_elems,
                           bytes_accessed=2 * n_elems * itemsize)

    extra_kwargs = {}
    if donate_input:
        # Only safe if the caller never reuses x after the activation.
        extra_kwargs["input_output_aliases"] = {0: 0}

    out = pl.pallas_call(
        laf_kernel,
        out_shape=jax.ShapeDtypeStruct((rows, lanes), dtype),
        grid_spec=pltpu.PrefetchScalarGridSpec(
            num_scalar_prefetch=0,
            grid=(nb,),
            in_specs=[pl.BlockSpec((tm, lanes), lambda i: (i, 0))],
            out_specs=pl.BlockSpec((tm, lanes), lambda i: (i, 0)),
        ),
        compiler_params=pltpu.CompilerParams(
            # parallel row-tile axis: shards across the 2 TCs on v7x, neutral
            # on v5e/v6e
            dimension_semantics=("parallel",),
            vmem_limit_bytes=vmem_limit,
        ),
        cost_estimate=cost,
        **extra_kwargs,
    )(x2)

    if padded:
        out = out.reshape(-1)[:total]
    return out.reshape(orig_shape)


def laf_reference(x):
    # Explicit formula from the PyTorch module (w0 = 0).
    num = (WP * WP) * x * G
    denom = ((W0 * W0) - x) ** 2 + (x * G) ** 2
    return num / denom


if __name__ == "__main__":
    key = jax.random.PRNGKey(0)

    # small NCHW-shaped input (batch=2, channels=4, spatial=16x16)
    x = jax.random.uniform(key, (2, 4, 16, 16), dtype=jnp.float32,
                           minval=0.1, maxval=2.0)
    y = jax.block_until_ready(laf_forward(x))
    assert y.shape == x.shape and y.dtype == x.dtype
    assert jnp.allclose(y, laf_reference(x), rtol=1e-5, atol=1e-6)

    # second tiny check exercising the ragged-last-block path (rows % tm != 0)
    x2 = jax.random.uniform(jax.random.PRNGKey(1), (2, 4, 20, 16),
                            dtype=jnp.float32, minval=0.1, maxval=2.0)
    y2 = jax.block_until_ready(laf_forward(x2))
    assert jnp.allclose(y2, laf_reference(x2), rtol=1e-5, atol=1e-6)

    print("KERNEL_OK")
</pallas_src>

<mosaic_0001>
module attributes {stable_mosaic.version = 11 : i64} {
  func.func @laf_kernel(%arg0: i32, %arg1: memref<8x256xf32, #tpu.memory_space<vmem>>, %arg2: memref<8x256xf32, #tpu.memory_space<vmem>>) attributes {dimension_semantics = [#tpu.dimension_semantics<parallel>], iteration_bounds = array<i64: 1>, scalar_prefetch = 0 : i64, scratch_operands = 0 : i64, tpu.core_type = #tpu.core_type<tc>, window_params = [{transform_indices = @transform_0, window_bounds = array<i64: 8, 256>}, {transform_indices = @transform_1, window_bounds = array<i64: 8, 256>}]} {
    %c0 = arith.constant 0 : index
    %c0_0 = arith.constant 0 : index
    %0 = vector.load %arg1[%c0, %c0_0] : memref<8x256xf32, #tpu.memory_space<vmem>>, vector<8x256xf32>
    %1 = tpu.reciprocal %0 : vector<8x256xf32> -> vector<8x256xf32>
    %cst = arith.constant 0.22277227 : f32
    %2 = vector.broadcast %cst : f32 to vector<8x256xf32>
    %3 = arith.mulf %2, %1 : vector<8x256xf32>
    %c0_1 = arith.constant 0 : index
    %c0_2 = arith.constant 0 : index
    %4 = vector.load %arg2[%c0_1, %c0_2] : memref<8x256xf32, #tpu.memory_space<vmem>>, vector<8x256xf32>
    tpu.vector_store %arg2[%c0_1, %c0_2], %3 {strides = array<i32>} : memref<8x256xf32, #tpu.memory_space<vmem>>, vector<8x256xf32>,
    return
  }
  func.func @transform_0(%arg0: i32) -> (i32, i32) {
    %c0_i32 = arith.constant 0 : i32
    %c0_i32_0 = arith.constant 0 : i32
    return %arg0, %c0_i32 : i32, i32
  }
  func.func @transform_1(%arg0: i32) -> (i32, i32) {
    %c0_i32 = arith.constant 0 : i32
    %c0_i32_0 = arith.constant 0 : i32
    return %arg0, %c0_i32 : i32, i32
  }
}

</mosaic_0001>

<bundles_post_ra>
// kernel: tpu_custom_call.1
= control target key start
LH: loop header
LB: loop body
LE: loop exit
PB: predicated region body
PF: predicated region fallthrough
CT: control target
= control target key end

     0   :  { %6 = vsyncpa [#allocation3], 0  ;;  %s134_s0 = inlined_call_operand.hbm [shape: f32[8,256], index: 0, kind: input, shape index: {}]   ;;  %s135_s1 = inlined_call_operand.hbm [shape: f32[8,256], index: 1, kind: output, shape index: {}]  }
   0x1   :  { %7 = vsyncpa [#allocation4], 0  ;;  %s98_s6 = smov [#allocation2]   ;;  %s50_s10 = scalar_lea.hbm %s134_s0, 256 }
   0x2   :  { %s14_s7 = sshll.u32 %s98_s6, 4  ;;  %p51_p0 = scmp.ne.s32.totalorder %s134_s0, %s50_s10  ;;  %s15_s7 = int_to_ptr.vmem [resolvable:$true] %s14_s7 }
   0x3   :  { %p54_p1 = scmp.lt.u32.totalorder %s50_s10, %s134_s0 }
   0x5   :  { %p56_p2 = pnand %p54_p1, %p51_p0 }
   0x7   :  { %59 = shalt.err (!%p56_p2)
}
   0x8   :  { %s60_s15 = scalar_lea.vmem %s15_s7, 256  ;;  %p65_p4 = scmp.lt.s32.totalorder %s15_s7, %s15_s7 }
   0x9   :  { %p61_p3 = scmp.ne.s32.totalorder %s15_s7, %s60_s15  ;;  %p66_p5 = scmp.lt.s32.totalorder %s60_s15, %s60_s15 }
   0xb   :  { %p67_p6 = por %p66_p5, %p65_p4 }
   0xd   :  { %p68_p7 = pnand %p67_p6, %p61_p3 }
   0xf   :  { %71 = shalt.err (!%p68_p7)
}
  0x10   :  { %17 = dma.hbm_to_vmem [thread:$0]  %s134_s0, 256, %s15_s7, [#allocation3]  }
  0x11   :  { %94 = dma.done.wait [#allocation3], 256  }
  0x12   :  { %95 = vsyncadd [#allocation3], 4294967040  ;;  %v21_v0 = vld [vmem:[#allocation2] sm:$0xff]  ;;  %v22_v1 = vld [vmem:[#allocation2 + $0x8] sm:$0xff]  ;;  %s99_s18 = smov [#allocation5]  }
  0x13   :  { %46 = vrcp.f32 %v21_v0  ;;  %s35_s19 = sshll.u32 %s99_s18, 4  ;;  %s36_s19 = int_to_ptr.vmem [resolvable:$true] %s35_s19 }
  0x14   :  { %48 = vrcp.f32 %v22_v1  ;;  %s72_s20 = scalar_lea.vmem %s36_s19, 256  ;;  %p77_p9 = scmp.lt.s32.totalorder %s36_s19, %s36_s19 }
  0x15   :  { %p73_p8 = scmp.ne.s32.totalorder %s36_s19, %s72_s20  ;;  %p78_p10 = scmp.lt.s32.totalorder %s72_s20, %s72_s20 }
  0x17   :  { %p79_p11 = por %p78_p10, %p77_p9 }
  0x19   :  { %p80_p12 = pnand %p79_p11, %p73_p8 }
  0x1d   :  { %v47_v2 = vpop.eup %46 }
  0x1e   :  { %v49_v3 = vpop.eup %48  ;;  %v25_v4 = vmul.f32 0.22277227, %v47_v2 }
  0x1f   :  { %v26_v5 = vmul.f32 0.22277227, %v49_v3 }
  0x20   :  { %27 = vst [vmem:[#allocation5] sm:$0xff] %v25_v4 }
  0x21   :  { %28 = vst [vmem:[#allocation5 + $0x8] sm:$0xff] %v26_v5 }
  0x22   :  { %83 = shalt.err (!%p80_p12)
}
  0x23   :  { %s84_s22 = scalar_lea.hbm %s135_s1, 256 }
  0x24   :  { %p85_p13 = scmp.ne.s32.totalorder %s135_s1, %s84_s22  ;;  %p88_p0 = scmp.lt.u32.totalorder %s84_s22, %s135_s1 }
  0x26   :  { %p90_p1 = pnand %p88_p0, %p85_p13 }
  0x28   :  { %93 = shalt.err (!%p90_p1)
}
  0x29   :  { %38 = dma.vmem_to_hbm [thread:$0]  %s36_s19, 256, %s135_s1, [#allocation4]  }
  0x2a   :  { %96 = dma.done.wait [#allocation4], 256  }
  0x2b   :  { %97 = vsyncadd [#allocation4], 4294967040 }
  0x2c   :  { %42 = vsyncpa [#allocation3], 1 }
  0x2d   :  { %43 = vsyncpa [#allocation4], 1 }

</bundles_post_ra>
